<compile_context>
chip_gen: v7x
topology: tpu7x:2x2x1
jax: 0.10.0
libtpu: 0.0.40
codegen_flags: <defaults>
</compile_context>

<pallas_src>
import jax
import jax.numpy as jnp
from jax.experimental import pallas as pl
from jax.experimental.pallas import tpu as pltpu


def _multi_mlp_kernel(x_ref, w_ref, o_ref):
    # x_ref: (TB, F, dim, dim)   one contiguous tile of TB batches, all fields
    # w_ref: (F, dim, dim)       pre-transposed weights (in, out), VMEM-resident
    # o_ref: (TB, F, dim, dim)
    tb, num_fields, d, _ = x_ref.shape
    for f in range(num_fields):  # F is small & static -> unrolled (LLO visible)
        # (TB, 1, d, d) -> (TB*d, d): big-M MXU matmul per field.  The leading
        # dims merge onto the sublane axis (d % 8 == 0), so no relayout.
        xf = x_ref[:, f:f + 1, :, :].reshape(tb * d, d)
        y = jnp.dot(xf, w_ref[f], preferred_element_type=jnp.float32)
        o_ref[:, f:f + 1, :, :] = y.reshape(tb, 1, d, d).astype(o_ref.dtype)


def _round_up(x, m):
    return ((x + m - 1) // m) * m


def multi_mlp_emb(x, weights, *, block_batch=None):
    """x: [B, F*dim, dim]; weights: [F, dim, dim] (out_features, in_features)."""
    B = x.shape[0]
    F, dim, dim_in = weights.shape
    assert dim == dim_in
    assert x.shape == (B, F * dim, dim)

    # Metadata-only reshape; no data movement.
    x4 = x.reshape(B, F, dim, dim)
    # Pre-transpose once (tiny array) so the kernel has no per-step transpose.
    wt = jnp.swapaxes(weights, 1, 2)  # (F, in, out)

    # --- batch-tile sizing -------------------------------------------------
    # VMEM footprint of one (tb, F, dim, dim) block, accounting for TPU tile
    # padding: lanes pad to 128, sublanes pad to the per-dtype tile.
    itemsize = x.dtype.itemsize
    sublane_tile = max(8, 32 // itemsize)          # 8 (f32), 16 (bf16), 32 (i8)
    padded_bytes_per_batch = (F * _round_up(dim, sublane_tile)
                              * _round_up(dim, 128) * itemsize)
    # Budget ~4 MiB per array per buffer: x + out, double-buffered -> ~16 MiB,
    # comfortably under the 32 MiB scoped VMEM limit set below (v5e/v6e/v7x).
    max_tb = max(1, (4 * 1024 * 1024) // padded_bytes_per_batch)

    if block_batch is not None:
        tb = block_batch
        assert B % tb == 0
    else:
        tb = 1
        for cand in range(min(B, max_tb), 0, -1):
            if B % cand == 0:
                tb = cand
                break
        # Prefer >= 2 grid steps: lets megacore parts shard the axis and gives
        # the pipeline something to overlap.
        if B // tb < 2 and tb % 2 == 0:
            tb //= 2
    grid = (B // tb,)

    flops = 2 * B * F * dim * dim * dim
    bytes_accessed = itemsize * (2 * B * F * dim * dim) + \
        weights.dtype.itemsize * (F * dim * dim)

    out4 = pl.pallas_call(
        _multi_mlp_kernel,
        out_shape=jax.ShapeDtypeStruct((B, F, dim, dim), x.dtype),
        grid_spec=pltpu.PrefetchScalarGridSpec(
            num_scalar_prefetch=0,
            grid=grid,
            in_specs=[
                # Contiguous (TB, F, dim, dim) batch tile.
                pl.BlockSpec((tb, F, dim, dim), lambda b: (b, 0, 0, 0)),
                # Full weight stack, constant block index -> DMA'd once, resident.
                pl.BlockSpec((F, dim, dim), lambda b: (0, 0, 0)),
            ],
            out_specs=pl.BlockSpec((tb, F, dim, dim), lambda b: (b, 0, 0, 0)),
        ),
        compiler_params=pltpu.CompilerParams(
            dimension_semantics=("parallel",),
            vmem_limit_bytes=32 * 1024 * 1024),
        cost_estimate=pl.CostEstimate(
            flops=flops, transcendentals=0, bytes_accessed=bytes_accessed),
    )(x4, wt)

    return out4.reshape(B, F * dim, dim)


def reference(x, weights):
    B = x.shape[0]
    F, dim, _ = weights.shape
    x4 = x.reshape(B, F, dim, dim)
    # y = x @ W^T per field (nn.Linear, bias=False)
    y4 = jnp.einsum("bfrd,fod->bfro", x4, weights)
    return y4.reshape(B, F * dim, dim)


if __name__ == "__main__":
    # small, deterministic setup
    field_num = 4
    dim = 32
    batch = 8

    key = jax.random.PRNGKey(0)
    kx, kw = jax.random.split(key)
    x = jax.random.normal(kx, (batch, field_num * dim, dim), dtype=jnp.float32)
    # deterministic weight init (stand-in for nn.Linear default init, bias=False)
    bound = 1.0 / (dim ** 0.5)
    weights = jax.random.uniform(kw, (field_num, dim, dim),
                                 minval=-bound, maxval=bound, dtype=jnp.float32)

    out = multi_mlp_emb(x, weights)
    out = jax.block_until_ready(out)

    ref = reference(x, weights)
    assert out.shape == x.shape
    assert jnp.allclose(out, ref, atol=1e-5, rtol=1e-5), "mismatch vs reference"

    print("KERNEL_OK")
</pallas_src>

<mosaic_0001>
module attributes {stable_mosaic.version = 11 : i64} {
  func.func @_multi_mlp_kernel(%arg0: i32, %arg1: memref<4x4x32x32xf32, #tpu.memory_space<vmem>>, %arg2: memref<4x32x32xf32, #tpu.memory_space<vmem>>, %arg3: memref<4x4x32x32xf32, #tpu.memory_space<vmem>>) attributes {dimension_semantics = [#tpu.dimension_semantics<parallel>], iteration_bounds = array<i64: 2>, scalar_prefetch = 0 : i64, scratch_operands = 0 : i64, tpu.core_type = #tpu.core_type<tc>, window_params = [{transform_indices = @transform_0, window_bounds = array<i64: 4, 4, 32, 32>}, {pipeline_mode = #tpu.pipeline_mode<synchronous>, transform_indices = @transform_1, window_bounds = array<i64: 4, 32, 32>}, {transform_indices = @transform_2, window_bounds = array<i64: 4, 4, 32, 32>}]} {
    %c0 = arith.constant 0 : index
    %c0_0 = arith.constant 0 : index
    %c0_1 = arith.constant 0 : index
    %c0_2 = arith.constant 0 : index
    %0 = vector.load %arg1[%c0, %c0_0, %c0_1, %c0_2] : memref<4x4x32x32xf32, #tpu.memory_space<vmem>>, vector<4x1x32x32xf32>
    %1 = vector.shape_cast %0 : vector<4x1x32x32xf32> to vector<128x32xf32>
    %c0_3 = arith.constant 0 : index
    %c0_4 = arith.constant 0 : index
    %c0_5 = arith.constant 0 : index
    %2 = vector.load %arg2[%c0_3, %c0_4, %c0_5] : memref<4x32x32xf32, #tpu.memory_space<vmem>>, vector<1x32x32xf32>
    %3 = vector.shape_cast %2 : vector<1x32x32xf32> to vector<32x32xf32>
    %cst = arith.constant dense<0.000000e+00> : vector<128x32xf32>
    %4 = tpu.matmul %1, %3, %cst {dimension_numbers = #tpu.dot_dimension_numbers<[1], [0], [0], [1], [0, 0, 1, 1], [], []>} : vector<128x32xf32>, vector<32x32xf32>, vector<128x32xf32> -> vector<128x32xf32>
    %5 = vector.shape_cast %4 : vector<128x32xf32> to vector<4x1x32x32xf32>
    %c0_6 = arith.constant 0 : index
    %c0_7 = arith.constant 0 : index
    %c0_8 = arith.constant 0 : index
    %c0_9 = arith.constant 0 : index
    %6 = vector.load %arg3[%c0_6, %c0_7, %c0_8, %c0_9] : memref<4x4x32x32xf32, #tpu.memory_space<vmem>>, vector<4x1x32x32xf32>
    tpu.vector_store %arg3[%c0_6, %c0_7, %c0_8, %c0_9], %5 {strides = array<i32>} : memref<4x4x32x32xf32, #tpu.memory_space<vmem>>, vector<4x1x32x32xf32>,
    %c0_10 = arith.constant 0 : index
    %c1 = arith.constant 1 : index
    %c0_11 = arith.constant 0 : index
    %c0_12 = arith.constant 0 : index
    %7 = vector.load %arg1[%c0_10, %c1, %c0_11, %c0_12] : memref<4x4x32x32xf32, #tpu.memory_space<vmem>>, vector<4x1x32x32xf32>
    %8 = vector.shape_cast %7 : vector<4x1x32x32xf32> to vector<128x32xf32>
    %c1_13 = arith.constant 1 : index
    %c0_14 = arith.constant 0 : index
    %c0_15 = arith.constant 0 : index
    %9 = vector.load %arg2[%c1_13, %c0_14, %c0_15] : memref<4x32x32xf32, #tpu.memory_space<vmem>>, vector<1x32x32xf32>
    %10 = vector.shape_cast %9 : vector<1x32x32xf32> to vector<32x32xf32>
    %cst_16 = arith.constant dense<0.000000e+00> : vector<128x32xf32>
    %11 = tpu.matmul %8, %10, %cst_16 {dimension_numbers = #tpu.dot_dimension_numbers<[1], [0], [0], [1], [0, 0, 1, 1], [], []>} : vector<128x32xf32>, vector<32x32xf32>, vector<128x32xf32> -> vector<128x32xf32>
    %12 = vector.shape_cast %11 : vector<128x32xf32> to vector<4x1x32x32xf32>
    %c0_17 = arith.constant 0 : index
    %c1_18 = arith.constant 1 : index
    %c0_19 = arith.constant 0 : index
    %c0_20 = arith.constant 0 : index
    %13 = vector.load %arg3[%c0_17, %c1_18, %c0_19, %c0_20] : memref<4x4x32x32xf32, #tpu.memory_space<vmem>>, vector<4x1x32x32xf32>
    tpu.vector_store %arg3[%c0_17, %c1_18, %c0_19, %c0_20], %12 {strides = array<i32>} : memref<4x4x32x32xf32, #tpu.memory_space<vmem>>, vector<4x1x32x32xf32>,
    %c0_21 = arith.constant 0 : index
    %c2 = arith.constant 2 : index
    %c0_22 = arith.constant 0 : index
    %c0_23 = arith.constant 0 : index
    %14 = vector.load %arg1[%c0_21, %c2, %c0_22, %c0_23] : memref<4x4x32x32xf32, #tpu.memory_space<vmem>>, vector<4x1x32x32xf32>
    %15 = vector.shape_cast %14 : vector<4x1x32x32xf32> to vector<128x32xf32>
    %c2_24 = arith.constant 2 : index
    %c0_25 = arith.constant 0 : index
    %c0_26 = arith.constant 0 : index
    %16 = vector.load %arg2[%c2_24, %c0_25, %c0_26] : memref<4x32x32xf32, #tpu.memory_space<vmem>>, vector<1x32x32xf32>
    %17 = vector.shape_cast %16 : vector<1x32x32xf32> to vector<32x32xf32>
    %cst_27 = arith.constant dense<0.000000e+00> : vector<128x32xf32>
    %18 = tpu.matmul %15, %17, %cst_27 {dimension_numbers = #tpu.dot_dimension_numbers<[1], [0], [0], [1], [0, 0, 1, 1], [], []>} : vector<128x32xf32>, vector<32x32xf32>, vector<128x32xf32> -> vector<128x32xf32>
    %19 = vector.shape_cast %18 : vector<128x32xf32> to vector<4x1x32x32xf32>
    %c0_28 = arith.constant 0 : index
    %c2_29 = arith.constant 2 : index
    %c0_30 = arith.constant 0 : index
    %c0_31 = arith.constant 0 : index
    %20 = vector.load %arg3[%c0_28, %c2_29, %c0_30, %c0_31] : memref<4x4x32x32xf32, #tpu.memory_space<vmem>>, vector<4x1x32x32xf32>
    tpu.vector_store %arg3[%c0_28, %c2_29, %c0_30, %c0_31], %19 {strides = array<i32>} : memref<4x4x32x32xf32, #tpu.memory_space<vmem>>, vector<4x1x32x32xf32>,
    %c0_32 = arith.constant 0 : index
    %c3 = arith.constant 3 : index
    %c0_33 = arith.constant 0 : index
    %c0_34 = arith.constant 0 : index
    %21 = vector.load %arg1[%c0_32, %c3, %c0_33, %c0_34] : memref<4x4x32x32xf32, #tpu.memory_space<vmem>>, vector<4x1x32x32xf32>
    %22 = vector.shape_cast %21 : vector<4x1x32x32xf32> to vector<128x32xf32>
    %c3_35 = arith.constant 3 : index
    %c0_36 = arith.constant 0 : index
    %c0_37 = arith.constant 0 : index
    %23 = vector.load %arg2[%c3_35, %c0_36, %c0_37] : memref<4x32x32xf32, #tpu.memory_space<vmem>>, vector<1x32x32xf32>
    %24 = vector.shape_cast %23 : vector<1x32x32xf32> to vector<32x32xf32>
    %cst_38 = arith.constant dense<0.000000e+00> : vector<128x32xf32>
    %25 = tpu.matmul %22, %24, %cst_38 {dimension_numbers = #tpu.dot_dimension_numbers<[1], [0], [0], [1], [0, 0, 1, 1], [], []>} : vector<128x32xf32>, vector<32x32xf32>, vector<128x32xf32> -> vector<128x32xf32>
    %26 = vector.shape_cast %25 : vector<128x32xf32> to vector<4x1x32x32xf32>
    %c0_39 = arith.constant 0 : index
    %c3_40 = arith.constant 3 : index
    %c0_41 = arith.constant 0 : index
    %c0_42 = arith.constant 0 : index
    %27 = vector.load %arg3[%c0_39, %c3_40, %c0_41, %c0_42] : memref<4x4x32x32xf32, #tpu.memory_space<vmem>>, vector<4x1x32x32xf32>
    tpu.vector_store %arg3[%c0_39, %c3_40, %c0_41, %c0_42], %26 {strides = array<i32>} : memref<4x4x32x32xf32, #tpu.memory_space<vmem>>, vector<4x1x32x32xf32>,
    return
  }
  func.func @transform_0(%arg0: i32) -> (i32, i32, i32, i32) {
    %c0_i32 = arith.constant 0 : i32
    %c0_i32_0 = arith.constant 0 : i32
    %c0_i32_1 = arith.constant 0 : i32
    %c0_i32_2 = arith.constant 0 : i32
    return %arg0, %c0_i32, %c0_i32_0, %c0_i32_1 : i32, i32, i32, i32
  }
  func.func @transform_1(%arg0: i32) -> (i32, i32, i32) {
    %c0_i32 = arith.constant 0 : i32
    %c0_i32_0 = arith.constant 0 : i32
    %c0_i32_1 = arith.constant 0 : i32
    %c0_i32_2 = arith.constant 0 : i32
    return %c0_i32, %c0_i32_0, %c0_i32_1 : i32, i32, i32
  }
  func.func @transform_2(%arg0: i32) -> (i32, i32, i32, i32) {
    %c0_i32 = arith.constant 0 : i32
    %c0_i32_0 = arith.constant 0 : i32
    %c0_i32_1 = arith.constant 0 : i32
    %c0_i32_2 = arith.constant 0 : i32
    return %arg0, %c0_i32, %c0_i32_0, %c0_i32_1 : i32, i32, i32, i32
  }
}

</mosaic_0001>

<bundles_post_ra>
// kernel: tpu_custom_call.1
= control target key start
LH: loop header
LB: loop body
LE: loop exit
PB: predicated region body
PF: predicated region fallthrough
CT: control target
= control target key end

     0   :  { %7 = vsyncpa [#allocation3], 0  ;;  %s2311_s0 = inlined_call_operand.hbm [shape: f32[8,4,32,32], index: 0, kind: input, shape index: {}]   ;;  %s2312_s1 = inlined_call_operand.hbm [shape: f32[4,32,32], index: 1, kind: input, shape index: {}]   ;;  %s2313_s2 = inlined_call_operand.hbm [shape: f32[8,4,32,32], index: 2, kind: output, shape index: {}]  }
   0x1   :  { %9 = vsyncpa [#allocation3 + $0x1], 0 }
   0x2   :  { %10 = vsyncpa [#allocation6], 0 }
   0x3   :  { %11 = vsyncpa [#allocation4], 0 }
   0x4   :  { %13 = vsyncpa [#allocation4 + $0x1], 0  ;;  %s1839_s9 = smov 0   ;;  %s1841_s10 = smov 0  }
   0x5   :  { %s1843_s11 = smov 0   ;;  %s1845_s12 = smov 0  }
   0x6 LB: > { %s1860_s13 = sadd.s32 4294967295, %s1815_s12   ;;  %s1204_s14 = sadd.s32 4294967294, %s1815_s12   ;;  %s1815_s12 = sphi %s1845_s12, %s2333_s12   ;;  %s1811_s11 = sphi %s1843_s11, %s2332_s11   ;;  %s1807_s10 = sphi %s1841_s10, %s2331_s10   ;;  %s1803_s9 = sphi %s1839_s9, %s2330_s9  }
   0x7   : > { %p39_p0 = scmp.ne.s32.totalorder %s1807_s10, %s1803_s9  ;;  %p2314_p1 = scmp.eq.s32.totalorder %s1860_s13, 0 }
   0x8   : > { %p90_p3 = scmp.eq.s32.totalorder %s1204_s14, 1  ;;  %p1205_p5 = scmp.ge.s32.totalorder %s1815_s12, 1 }
   0x9   : > { %p1869_p4 = por %p2314_p1, %p39_p0  ;;  %p97_p7 = scmp.lt.s32.totalorder %s1815_s12, 3 }
   0xa   : > { %p1874_p6 = por %p90_p3, %p39_p0  ;;  %s1817_s18 = smov [#allocation5]  }
   0xb   : > { %s2317_s15 = scalar_select %p1869_p4, 1, 0 }
   0xc   : > { %s2318_s16 = scalar_select %p1874_p6, 1, 0 }
   0xd   : > { %p1879_p8 = pnand %p1205_p5, %p97_p7  ;;  %s109_s19 = sshll.u32 %s1817_s18, 4  ;;  %s1883_s19 = int_to_ptr.vmem [resolvable:$true] %s109_s19 }
   0xe   : > { %s1895_s21 = sadd.s32 1, %s1815_s12   ;;  %s26_s22 = sadd.s32 1, %s1811_s11 }
   0xf   : > { %s2319_s17 = scalar_select %p1879_p8, 1, 0 }
  0x10   : > { %p1634_p9 = pneg %p1879_p8  ;;  %s23_s23 = ssub.s32 %s1815_s12, %s1895_s21 }
  0x11   : > { %s1687_s26 = scalar_lea.hbm %s2312_s1, 2048 }
  0x12   : > { %p1890_p11 = pnand %p1634_p9, %p2314_p1  ;;  %p1688_p12 = scmp.ne.s32.totalorder %s2312_s1, %s1687_s26 }
  0x13   : > { %p1694_p5 = scmp.lt.u32.totalorder %s1687_s26, %s2312_s1 }
  0x14   : > { %p1689_p13 = pneg %p1890_p11 }
  0x16   : > { %p1690_p0 = pnand %p1689_p13, %p1688_p12 }
  0x18   : > { %p1691_p3 = pneg %p1690_p0 }
  0x1a   : > { %p1696_p7 = pnand %p1694_p5, %p1691_p3 }
  0x1c   : > { %1699 = shalt.err (!%p1696_p7)
}
  0x1d   : > { %s1700_s3 = scalar_lea.vmem %s1883_s19, 2048  ;;  %p1708_p2 = scmp.lt.s32.totalorder %s1883_s19, %s1883_s19 }
  0x1e   : > { %p1701_p9 = scmp.ne.s32.totalorder %s1883_s19, %s1700_s3  ;;  %p1709_p6 = scmp.lt.s32.totalorder %s1700_s3, %s1700_s3 }
  0x20   : > { %p1703_p10 = pnand %p1701_p9, %p1689_p13  ;;  %p1710_p4 = por %p1709_p6, %p1708_p2 }
  0x22   : > { %p1704_p1 = pneg %p1703_p10 }
  0x24   : > { %p1711_p8 = pnand %p1710_p4, %p1704_p1 }
  0x26   : > { %1714 = shalt.err (!%p1711_p8)
}
  0x27   : > { %s1818_s4 = smov 128   ;;  %s1819_s5 = smov 8  }
  0x28   : > { %1637 = dma.hbm_to_vmem [thread:$0]  (!%p1890_p11), %s2312_s1, 2048, %s1883_s19, [#allocation6], %s1818_s4, %s1818_s4, %s1819_s5  }
  0x29   : > { %p24_p1 = scmp.eq.s32.totalorder %s23_s23, 0  ;;  %p33_p2 = scmp.ne.s32.totalorder %s1811_s11, %s1807_s10 }
  0x2a   : > { %p34_p4 = scmp.eq.s32.totalorder %s1815_s12, 0  ;;  %p1647_p6 = scmp.lt.s32.totalorder %s1815_s12, 2 }
  0x2b   : > { %s1929_s8 = scalar_select %p24_p1, %s1811_s11, %s26_s22  }
  0x2c   : > { %p35_p8 = por %p34_p4, %p33_p2  ;;  %p2321_p10 = scmp.eq.s32.totalorder %s1860_s13, 1 }
  0x2d   : > { %s123_s18 = sand.u32 1, %s1811_s11   ;;  %s1383_s20 = sshll.u32 %s1815_s12, 13 }
  0x2e   : > { %p1933_p12 = por %p2321_p10, %p33_p2  ;;  %s1208_s24 = sshll.u32 %s123_s18, 9 }
  0x2f   : > { %s1942_s27 = scalar_lea.hbm %s2311_s0, %s1383_s20  ;;  %s127_s19 = scalar_lea.vmem [#allocation2], %s1208_s24 }
  0x30   : > { %s135_s22 = sshll.u32 %s127_s19, 4  ;;  %p1944_p11 = pnand %p1647_p6, %p35_p8  ;;  %s1948_s22 = int_to_ptr.vmem [resolvable:$true] %s135_s22 }
  0x31   : > { %s1950_s28 = scalar_lea.sflag [#allocation3], %s123_s18  ;;  %s1715_s29 = scalar_lea.hbm %s1942_s27, 8192 }
  0x32   : > { %p1716_p13 = scmp.ne.s32.totalorder %s1942_s27, %s1715_s29  ;;  %p1717_p0 = pneg %p1944_p11 }
  0x33   : > { %s1720_s6 = scalar_lea.hbm %s2311_s0, 16384  ;;  %p1721_p7 = scmp.lt.u32.totalorder %s1942_s27, %s2311_s0 }
  0x34   : > { %p1718_p3 = pnand %p1717_p0, %p1716_p13  ;;  %p1722_p9 = scmp.lt.u32.totalorder %s1720_s6, %s1715_s29 }
  0x35   : > { %p1724_p2 = scmp.lt.u32.totalorder %s1715_s29, %s1942_s27 }
  0x36   : > { %p1719_p5 = pneg %p1718_p3  ;;  %p1723_p1 = por %p1722_p9, %p1721_p7 }
  0x38   : > { %p1725_p4 = por %p1724_p2, %p1723_p1 }
  0x3a   : > { %p1726_p6 = pnand %p1725_p4, %p1719_p5 }
  0x3c   : > { %1729 = shalt.err (!%p1726_p6)
}
  0x3d   : > { %s1730_s18 = scalar_lea.vmem %s1948_s22, 8192  ;;  %s1820_s24 = smov [#allocation2]  }
  0x3e   : > { %p1731_p8 = scmp.ne.s32.totalorder %s1948_s22, %s1730_s18  ;;  %s1735_s25 = sshll.u32 %s1820_s24, 4  ;;  %s1736_s25 = int_to_ptr.vmem [resolvable:$false] %s1735_s25 }
  0x3f   : > { %s1737_s26 = scalar_lea.vmem %s1736_s25, 16384  ;;  %p1738_p3 = scmp.lt.s32.totalorder %s1948_s22, %s1736_s25 }
  0x40   : > { %p1733_p10 = pnand %p1731_p8, %p1717_p0  ;;  %p1739_p7 = scmp.lt.s32.totalorder %s1737_s26, %s1730_s18 }
  0x42   : > { %p1734_p13 = pneg %p1733_p10  ;;  %p1740_p9 = por %p1739_p7, %p1738_p3 }
  0x44   : > { %p1741_p1 = pnand %p1740_p9, %p1734_p13 }
  0x46   : > { %1744 = shalt.err (!%p1741_p1)
}
  0x47   : > { %1641 = dma.hbm_to_vmem [thread:$0]  (!%p1944_p11), %s1942_s27, 8192, %s1948_s22, %s1950_s28, %s1818_s4, %s1818_s4, %s1819_s5  }
  0x48   : > { %p2324_p0 = scmp.ne.s32.totalorder %s2319_s17, 0 }
  0x49   : > { %s1984_s19 = sand.u32 (!%p2324_p0), 1, %s1807_s10   ;;  %p2325_p5 = scmp.ne.s32.totalorder (!%p2324_p0), %s2317_s15, 0 }
  0x4a   : > { %147 = sbr.rel (%p2324_p0) target bundleno = 385 (0x181), region = 28  ;;  %s1213_s29 = sshll.u32 (!%p2324_p0), %s1984_s19, 9 }
  0x4b   : > { %s150_s30 = scalar_lea.sflag (!%p2324_p0), [#allocation3], %s1984_s19  ;;  %s1990_s23 = scalar_lea.vmem (!%p2324_p0), [#allocation2], %s1213_s29 }
  0x51   : > { %1790 = dma.done.wait (%p2325_p5), %s150_s30, 8192  }
  0x52   : > { %1792 = vsyncadd (%p2325_p5), %s150_s30, 4294959104  ;;  %p2326_p11 = scmp.eq.s32.totalorder %s1860_s13, 0 }
  0x54   : > { %1794 = dma.done.wait (%p2326_p11), [#allocation6], 2048   ;;  %p2327_p2 = pmov %p2326_p11 }
  0x55   : > { %v196_v0 = vld [vmem:[#allocation5] sm:$0xff]  ;;  %v197_v1 = vld [vmem:[#allocation5 + $0x8] sm:$0xff]  ;;  %vm200_vm0 = vcmask 261120   ;;  %v198_v5 = vld [vmem:[#allocation5 + $0x10] sm:$0xff]  ;;  %s2130_s15 = scalar_lea.vmem [#allocation7], %s1213_s29  ;;  %s1385_s17 = sshll.u32 %s1860_s13, 13 }
  0x56   : > { %1796 = vsyncadd (%p2327_p2), [#allocation6], 4294965248  ;;  %v428_v2 = vld [vmem:[#allocation5 + $0x20] sm:$0xff]  ;;  %v1594_v3 = vpack.c.bf16 %v197_v1, %v196_v0  ;;  %v429_v4 = vld [vmem:[#allocation5 + $0x28] sm:$0xff]  ;;  %s1121_s4 = sshll.u32 %s2130_s15, 4  ;;  %s2257_s22 = scalar_lea.hbm %s2313_s2, %s1385_s17  ;;  %s2259_s4 = int_to_ptr.vmem [resolvable:$true] %s1121_s4 }
  0x57   : > { %v199_v6 = vld [vmem:[#allocation5 + $0x18] sm:$0xff]  ;;  %v1602_v7 = vpack.c.bf16 %v429_v4, %v428_v2  ;;  %v430_v9 = vld [vmem:[#allocation5 + $0x30] sm:$0xff]  ;;  %v180_v11 = vld [vmem:[%s1990_s23] sm:$0xff]  ;;  %s1107_s13 = scalar_lea.sflag [#allocation4], %s1984_s19  ;;  %s1745_s28 = scalar_lea.vmem %s2259_s4, 8192 }
  0x58   : > { %v1598_v8 = vpack.c.bf16 %v199_v6, %v198_v5  ;;  %v431_v10 = vld [vmem:[#allocation5 + $0x38] sm:$0xff]  ;;  %1595 = vmatprep.subr.bf16.mxu0 %v1594_v3  ;;  %1474 = vmatprep.mubr.msk.f32.mxu0 %vm200_vm0, %v180_v11  ;;  %v1232_v13 = vld [vmem:[%s1990_s23 + $0x20] sm:$0xff]  ;;  %v661_v15 = vld [vmem:[#allocation5 + $0x48] sm:$0xff]  ;;  %p1746_p4 = scmp.ne.s32.totalorder %s2259_s4, %s1745_s28  ;;  %s1821_s3 = smov [#allocation7]  }
  0x59   : > { %v1606_v12 = vpack.c.bf16 %v431_v10, %v430_v9  ;;  %1603 = vmatprep.subr.bf16.mxu1 %v1602_v7  ;;  %1597 = vmatpush3.bf16.msra.mxu0 %v1594_v3  ;;  %v660_v14 = vld [vmem:[#allocation5 + $0x40] sm:$0xff]  ;;  %v893_v18 = vld [vmem:[#allocation5 + $0x68] sm:$0xff]  ;;  %v182_v22 = vld [vmem:[%s1990_s23 + $0x10] sm:$0xff]  ;;  %s1749_s6 = sshll.u32 %s1821_s3, 4  ;;  %s1750_s6 = int_to_ptr.vmem [resolvable:$false] %s1749_s6 }
  0x5a   : > { %v892_v16 = vld [vmem:[#allocation5 + $0x60] sm:$0xff]  ;;  %1605 = vmatpush3.bf16.msra.mxu1 %v1602_v7  ;;  %1599 = vmatprep.subr.bf16.mxu0 %v1598_v8  ;;  %v1610_v17 = vpack.c.bf16 %v661_v15, %v660_v14  ;;  %v181_v20 = vld [vmem:[%s1990_s23 + $0x8] sm:$0xff]  ;;  %v1234_v23 = vld [vmem:[%s1990_s23 + $0x30] sm:$0xff]  ;;  %p1747_p6 = pnand %p1746_p4, %p1933_p12  ;;  %s1751_s7 = scalar_lea.vmem %s1750_s6, 16384 }
  0x5b   : > { %1607 = vmatprep.subr.bf16.mxu1 %v1606_v12  ;;  %1506 = vmatprep.mubr.msk.f32.mxu1 %vm200_vm0, %v1232_v13  ;;  %v1618_v19 = vpack.c.bf16 %v893_v18, %v892_v16  ;;  %v1233_v21 = vld [vmem:[%s1990_s23 + $0x28] sm:$0xff]  ;;  %v662_v24 = vld [vmem:[#allocation5 + $0x50] sm:$0xff]  ;;  %v663_v25 = vld [vmem:[#allocation5 + $0x58] sm:$0xff]  ;;  %p1752_p10 = scmp.lt.s32.totalorder %s2259_s4, %s1750_s6  ;;  %p1753_p13 = scmp.lt.s32.totalorder %s1751_s7, %s1745_s28 }
  0x5c   : > { %v894_v26 = vld [vmem:[#allocation5 + $0x70] sm:$0xff]  ;;  %v895_v27 = vld [vmem:[#allocation5 + $0x78] sm:$0xff]  ;;  %v1614_v29 = vpack.c.bf16 %v663_v25, %v662_v24  ;;  %v184_v32 = vld [vmem:[%s1990_s23 + $0x80] sm:$0xff]  ;;  %p1748_p8 = pneg %p1747_p6 }
  0x5d   : > { %1601 = vmatpush3.bf16.msra.mxu0 %v1598_v8  ;;  %v183_v28 = vld [vmem:[%s1990_s23 + $0x18] sm:$0xff]  ;;  %v1622_v30 = vpack.c.bf16 %v895_v27, %v894_v26  ;;  %v1236_v33 = vld [vmem:[%s1990_s23 + $0xa0] sm:$0xff]  ;;  %v185_v34 = vld [vmem:[%s1990_s23 + $0x88] sm:$0xff]  ;;  %p1754_p3 = por %p1753_p13, %p1752_p10 }
  0x5e   : > { %1609 = vmatpush3.bf16.msra.mxu1 %v1606_v12  ;;  %1611 = vmatprep.subr.bf16.mxu0 %v1610_v17  ;;  %v1235_v31 = vld [vmem:[%s1990_s23 + $0x38] sm:$0xff]  ;;  %v1237_v35 = vld [vmem:[%s1990_s23 + $0xa8] sm:$0xff]  ;;  %v186_v36 = vld [vmem:[%s1990_s23 + $0x90] sm:$0xff] }
  0x5f   : > { %1619 = vmatprep.subr.bf16.mxu1 %v1618_v19  ;;  %v1238_v37 = vld [vmem:[%s1990_s23 + $0xb0] sm:$0xff]  ;;  %v187_v38 = vld [vmem:[%s1990_s23 + $0x98] sm:$0xff]  ;;  %v188_v40 = vld [vmem:[%s1990_s23 + $0x100] sm:$0xff]  ;;  %p1755_p7 = pnand %p1754_p3, %p1748_p8 }
  0x60   : > { %1475 = vmatmul.mubr.msk.f32.vlgmr.msra.gmra.mrb[0].mxu0 %vm200_vm0, %v181_v20  ;;  %v1239_v39 = vld [vmem:[%s1990_s23 + $0xb8] sm:$0xff]  ;;  %v1240_v41 = vld [vmem:[%s1990_s23 + $0x120] sm:$0xff]  ;;  %v189_v42 = vld [vmem:[%s1990_s23 + $0x108] sm:$0xff] }
  0x61   : > { %1507 = vmatmul.mubr.msk.f32.vlgmr.msra.gmra.mrb[0].mxu1 %vm200_vm0, %v1233_v21  ;;  %1613 = vmatpush3.bf16.msra.mxu0 %v1610_v17  ;;  %v1241_v43 = vld [vmem:[%s1990_s23 + $0x128] sm:$0xff]  ;;  %v190_v44 = vld [vmem:[%s1990_s23 + $0x110] sm:$0xff]  ;;  %v191_v46 = vld [vmem:[%s1990_s23 + $0x118] sm:$0xff] }
  0x62   : > { %1621 = vmatpush3.bf16.msra.mxu1 %v1618_v19  ;;  %1477 = vmatprep.mubr.msk.f32.mxu0 %vm200_vm0, %v182_v22  ;;  %v1242_v45 = vld [vmem:[%s1990_s23 + $0x130] sm:$0xff]  ;;  %v1243_v47 = vld [vmem:[%s1990_s23 + $0x138] sm:$0xff]  ;;  %v192_v48 = vld [vmem:[%s1990_s23 + $0x180] sm:$0xff] }
  0x63   : > { %1509 = vmatprep.mubr.msk.f32.mxu1 %vm200_vm0, %v1234_v23  ;;  %1615 = vmatprep.subr.bf16.mxu0 %v1614_v29  ;;  %v1244_v49 = vld [vmem:[%s1990_s23 + $0x1a0] sm:$0xff]  ;;  %v193_v50 = vld [vmem:[%s1990_s23 + $0x188] sm:$0xff]  ;;  %v194_v52 = vld [vmem:[%s1990_s23 + $0x190] sm:$0xff] }
  0x64   : > { %1478 = vmatmul.mubr.msk.f32.gmra.mrb[2].mxu0 %vm200_vm0, %v183_v28  ;;  %1623 = vmatprep.subr.bf16.mxu1 %v1622_v30  ;;  %v1245_v51 = vld [vmem:[%s1990_s23 + $0x1a8] sm:$0xff]  ;;  %v1246_v53 = vld [vmem:[%s1990_s23 + $0x1b0] sm:$0xff]  ;;  %v195_v54 = vld [vmem:[%s1990_s23 + $0x198] sm:$0xff] }
  0x65   : > { %1510 = vmatmul.mubr.msk.f32.gmra.mrb[2].mxu1 %vm200_vm0, %v1235_v31  ;;  %1480 = vmatprep.mubr.msk.f32.mxu0 %vm200_vm0, %v184_v32  ;;  %v1247_v55 = vld [vmem:[%s1990_s23 + $0x1b8] sm:$0xff]  ;;  %v1280_v56 = vld [vmem:[%s1990_s23 + $0x40] sm:$0xff]  ;;  %v1281_v58 = vld [vmem:[%s1990_s23 + $0x48] sm:$0xff] }
  0x66   : > { %1512 = vmatprep.mubr.msk.f32.mxu1 %vm200_vm0, %v1236_v33  ;;  %1617 = vmatpush3.bf16.msra.mxu0 %v1614_v29  ;;  %v1328_v57 = vld [vmem:[%s1990_s23 + $0x60] sm:$0xff]  ;;  %v1329_v59 = vld [vmem:[%s1990_s23 + $0x68] sm:$0xff]  ;;  %v1282_v60 = vld [vmem:[%s1990_s23 + $0x50] sm:$0xff] }
  0x67   : > { %1625 = vmatpush3.bf16.msra.mxu1 %v1622_v30  ;;  %v1330_v61 = vld [vmem:[%s1990_s23 + $0x70] sm:$0xff]  ;;  %v1283_v62 = vld [vmem:[%s1990_s23 + $0x58] sm:$0xff]  ;;  %v1284_v0 = vld [vmem:[%s1990_s23 + $0xc0] sm:$0xff] }
  0x68   : > { %1481 = vmatmul.mubr.msk.f32.gmra.mrb[4].mxu0 %vm200_vm0, %v185_v34  ;;  %v1331_v63 = vld [vmem:[%s1990_s23 + $0x78] sm:$0xff]  ;;  %v1332_v1 = vld [vmem:[%s1990_s23 + $0xe0] sm:$0xff]  ;;  %v1285_v2 = vld [vmem:[%s1990_s23 + $0xc8] sm:$0xff] }
  0x69   : > { %1513 = vmatmul.mubr.msk.f32.gmra.mrb[4].mxu1 %vm200_vm0, %v1237_v35  ;;  %1483 = vmatprep.mubr.msk.f32.mxu0 %vm200_vm0, %v186_v36  ;;  %v1333_v3 = vld [vmem:[%s1990_s23 + $0xe8] sm:$0xff]  ;;  %v1286_v4 = vld [vmem:[%s1990_s23 + $0xd0] sm:$0xff]  ;;  %v1287_v6 = vld [vmem:[%s1990_s23 + $0xd8] sm:$0xff] }
  0x6a   : > { %1515 = vmatprep.mubr.msk.f32.mxu1 %vm200_vm0, %v1238_v37  ;;  %v1334_v5 = vld [vmem:[%s1990_s23 + $0xf0] sm:$0xff]  ;;  %v1335_v7 = vld [vmem:[%s1990_s23 + $0xf8] sm:$0xff]  ;;  %v1288_v8 = vld [vmem:[%s1990_s23 + $0x140] sm:$0xff] }
  0x6b   : > { %v1336_v9 = vld [vmem:[%s1990_s23 + $0x160] sm:$0xff]  ;;  %v1289_v10 = vld [vmem:[%s1990_s23 + $0x148] sm:$0xff]  ;;  %v1290_v12 = vld [vmem:[%s1990_s23 + $0x150] sm:$0xff] }
  0x6c   : > { %1484 = vmatmul.mubr.msk.f32.gmra.mrb[6].mxu0 %vm200_vm0, %v187_v38  ;;  %v1337_v11 = vld [vmem:[%s1990_s23 + $0x168] sm:$0xff]  ;;  %v1338_v13 = vld [vmem:[%s1990_s23 + $0x170] sm:$0xff]  ;;  %v1291_v14 = vld [vmem:[%s1990_s23 + $0x158] sm:$0xff] }
  0x6d   : > { %1516 = vmatmul.mubr.msk.f32.gmra.mrb[6].mxu1 %vm200_vm0, %v1239_v39  ;;  %1486 = vmatprep.mubr.msk.f32.mxu0 %vm200_vm0, %v188_v40  ;;  %v1339_v15 = vld [vmem:[%s1990_s23 + $0x178] sm:$0xff]  ;;  %v1292_v16 = vld [vmem:[%s1990_s23 + $0x1c0] sm:$0xff]  ;;  %v1293_v18 = vld [vmem:[%s1990_s23 + $0x1c8] sm:$0xff] }
  0x6e   : > { %1518 = vmatprep.mubr.msk.f32.mxu1 %vm200_vm0, %v1240_v41  ;;  %v1340_v17 = vld [vmem:[%s1990_s23 + $0x1e0] sm:$0xff]  ;;  %v1341_v19 = vld [vmem:[%s1990_s23 + $0x1e8] sm:$0xff]  ;;  %v1294_v20 = vld [vmem:[%s1990_s23 + $0x1d0] sm:$0xff] }
  0x6f   : > { %v1342_v21 = vld [vmem:[%s1990_s23 + $0x1f0] sm:$0xff]  ;;  %v1295_v22 = vld [vmem:[%s1990_s23 + $0x1d8] sm:$0xff] }
  0x70   : > { %1487 = vmatmul.mubr.msk.f32.gmra.mrb[8].mxu0 %vm200_vm0, %v189_v42  ;;  %v1343_v23 = vld [vmem:[%s1990_s23 + $0x1f8] sm:$0xff] }
  0x71   : > { %1519 = vmatmul.mubr.msk.f32.gmra.mrb[8].mxu1 %vm200_vm0, %v1241_v43  ;;  %1489 = vmatprep.mubr.msk.f32.mxu0 %vm200_vm0, %v190_v44 }
  0x72   : > { %1521 = vmatprep.mubr.msk.f32.mxu1 %vm200_vm0, %v1242_v45 }
  0x74   : > { %1490 = vmatmul.mubr.msk.f32.gmra.mrb[10].mxu0 %vm200_vm0, %v191_v46 }
  0x75   : > { %1522 = vmatmul.mubr.msk.f32.gmra.mrb[10].mxu1 %vm200_vm0, %v1243_v47  ;;  %1492 = vmatprep.mubr.msk.f32.mxu0 %vm200_vm0, %v192_v48 }
  0x76   : > { %1524 = vmatprep.mubr.msk.f32.mxu1 %vm200_vm0, %v1244_v49 }
  0x78   : > { %1493 = vmatmul.mubr.msk.f32.gmra.mrb[12].mxu0 %vm200_vm0, %v193_v50 }
  0x79   : > { %1525 = vmatmul.mubr.msk.f32.gmra.mrb[12].mxu1 %vm200_vm0, %v1245_v51  ;;  %1495 = vmatprep.mubr.msk.f32.mxu0 %vm200_vm0, %v194_v52 }
  0x7a   : > { %1527 = vmatprep.mubr.msk.f32.mxu1 %vm200_vm0, %v1246_v53 }
  0x7c   : > { %1496 = vmatmul.mubr.msk.f32.gmra.mrb[14].mxu0 %vm200_vm0, %v195_v54 }
  0x7d   : > { %1528 = vmatmul.mubr.msk.f32.gmra.mrb[14].mxu1 %vm200_vm0, %v1247_v55  ;;  %1538 = vmatprep.mubr.msk.f32.mxu0 %vm200_vm0, %v1280_v56 }
  0x7e   : > { %1570 = vmatprep.mubr.msk.f32.mxu1 %vm200_vm0, %v1328_v57 }
  0x80   : > { %1539 = vmatmul.mubr.msk.f32.vlgmr.msra.gmra.mrb[16].mxu0 %vm200_vm0, %v1281_v58 }
  0x81   : > { %1571 = vmatmul.mubr.msk.f32.vlgmr.msra.gmra.mrb[16].mxu1 %vm200_vm0, %v1329_v59  ;;  %1541 = vmatprep.mubr.msk.f32.mxu0 %vm200_vm0, %v1282_v60 }
  0x82   : > { %1573 = vmatprep.mubr.msk.f32.mxu1 %vm200_vm0, %v1330_v61 }
  0x84   : > { %1542 = vmatmul.mubr.msk.f32.gmra.mrb[18].mxu0 %vm200_vm0, %v1283_v62 }
  0x85   : > { %1574 = vmatmul.mubr.msk.f32.gmra.mrb[18].mxu1 %vm200_vm0, %v1331_v63  ;;  %1544 = vmatprep.mubr.msk.f32.mxu0 %vm200_vm0, %v1284_v0 }
  0x86   : > { %1576 = vmatprep.mubr.msk.f32.mxu1 %vm200_vm0, %v1332_v1 }
  0x88   : > { %1545 = vmatmul.mubr.msk.f32.gmra.mrb[20].mxu0 %vm200_vm0, %v1285_v2 }
  0x89   : > { %1577 = vmatmul.mubr.msk.f32.gmra.mrb[20].mxu1 %vm200_vm0, %v1333_v3  ;;  %1547 = vmatprep.mubr.msk.f32.mxu0 %vm200_vm0, %v1286_v4 }
  0x8a   : > { %1579 = vmatprep.mubr.msk.f32.mxu1 %vm200_vm0, %v1334_v5 }
  0x8c   : > { %1548 = vmatmul.mubr.msk.f32.gmra.mrb[22].mxu0 %vm200_vm0, %v1287_v6 }
  0x8d   : > { %1580 = vmatmul.mubr.msk.f32.gmra.mrb[22].mxu1 %vm200_vm0, %v1335_v7  ;;  %1550 = vmatprep.mubr.msk.f32.mxu0 %vm200_vm0, %v1288_v8 }
  0x8e   : > { %1582 = vmatprep.mubr.msk.f32.mxu1 %vm200_vm0, %v1336_v9 }
  0x90   : > { %1551 = vmatmul.mubr.msk.f32.gmra.mrb[24].mxu0 %vm200_vm0, %v1289_v10 }
  0x91   : > { %1583 = vmatmul.mubr.msk.f32.gmra.mrb[24].mxu1 %vm200_vm0, %v1337_v11  ;;  %1553 = vmatprep.mubr.msk.f32.mxu0 %vm200_vm0, %v1290_v12 }
  0x92   : > { %1585 = vmatprep.mubr.msk.f32.mxu1 %vm200_vm0, %v1338_v13 }
  0x94   : > { %1554 = vmatmul.mubr.msk.f32.gmra.mrb[26].mxu0 %vm200_vm0, %v1291_v14 }
  0x95   : > { %1586 = vmatmul.mubr.msk.f32.gmra.mrb[26].mxu1 %vm200_vm0, %v1339_v15  ;;  %1556 = vmatprep.mubr.msk.f32.mxu0 %vm200_vm0, %v1292_v16 }
  0x96   : > { %1588 = vmatprep.mubr.msk.f32.mxu1 %vm200_vm0, %v1340_v17 }
  0x98   : > { %1557 = vmatmul.mubr.msk.f32.gmra.mrb[28].mxu0 %vm200_vm0, %v1293_v18 }
  0x99   : > { %1589 = vmatmul.mubr.msk.f32.gmra.mrb[28].mxu1 %vm200_vm0, %v1341_v19  ;;  %1559 = vmatprep.mubr.msk.f32.mxu0 %vm200_vm0, %v1294_v20 }
  0x9a   : > { %1591 = vmatprep.mubr.msk.f32.mxu1 %vm200_vm0, %v1342_v21 }
  0x9c   : > { %1560 = vmatmul.mubr.msk.f32.gmra.mrb[30].mxu0 %vm200_vm0, %v1295_v22 }
  0x9d   : > { %1592 = vmatmul.mubr.msk.f32.gmra.mrb[30].mxu1 %vm200_vm0, %v1343_v23 }
 0x133   : > { %v1476_v24 = vpop.f32.mrb[0].mxu0 }
 0x134   : > { %395 = vst.msk [vmem:[%s2130_s15 + $0x8] sm:$0xff] %vm200_vm0, %v1476_v24  ;;  %v1508_v25 = vpop.f32.mrb[0].mxu1  ;;  %v315_v26 = vpop.f32.mrb[1].mxu0 }
 0x135   : > { %1265 = vst.msk [vmem:[%s2130_s15 + $0x28] sm:$0xff] %vm200_vm0, %v1508_v25  ;;  %394 = vst.msk [vmem:[%s2130_s15] sm:$0xff] %vm200_vm0, %v315_v26  ;;  %v546_v27 = vpop.f32.mrb[1].mxu1 }
 0x136   : > { %1264 = vst.msk [vmem:[%s2130_s15 + $0x20] sm:$0xff] %vm200_vm0, %v546_v27 }
 0x137   : > { %v1479_v28 = vpop.f32.mrb[2].mxu0 }
 0x138   : > { %397 = vst.msk [vmem:[%s2130_s15 + $0x18] sm:$0xff] %vm200_vm0, %v1479_v28  ;;  %v1511_v29 = vpop.f32.mrb[2].mxu1  ;;  %v325_v30 = vpop.f32.mrb[3].mxu0 }
 0x139   : > { %1267 = vst.msk [vmem:[%s2130_s15 + $0x38] sm:$0xff] %vm200_vm0, %v1511_v29  ;;  %396 = vst.msk [vmem:[%s2130_s15 + $0x10] sm:$0xff] %vm200_vm0, %v325_v30  ;;  %v556_v31 = vpop.f32.mrb[3].mxu1 }
 0x13a   : > { %1266 = vst.msk [vmem:[%s2130_s15 + $0x30] sm:$0xff] %vm200_vm0, %v556_v31 }
 0x13b   : > { %v1482_v32 = vpop.f32.mrb[4].mxu0 }
 0x13c   : > { %399 = vst.msk [vmem:[%s2130_s15 + $0x88] sm:$0xff] %vm200_vm0, %v1482_v32  ;;  %v1514_v33 = vpop.f32.mrb[4].mxu1  ;;  %v335_v34 = vpop.f32.mrb[5].mxu0 }
 0x13d   : > { %1269 = vst.msk [vmem:[%s2130_s15 + $0xa8] sm:$0xff] %vm200_vm0, %v1514_v33  ;;  %398 = vst.msk [vmem:[%s2130_s15 + $0x80] sm:$0xff] %vm200_vm0, %v335_v34  ;;  %v566_v35 = vpop.f32.mrb[5].mxu1 }
 0x13e   : > { %1268 = vst.msk [vmem:[%s2130_s15 + $0xa0] sm:$0xff] %vm200_vm0, %v566_v35 }
 0x13f   : > { %v1485_v36 = vpop.f32.mrb[6].mxu0 }
 0x140   : > { %401 = vst.msk [vmem:[%s2130_s15 + $0x98] sm:$0xff] %vm200_vm0, %v1485_v36  ;;  %v1517_v37 = vpop.f32.mrb[6].mxu1  ;;  %v345_v38 = vpop.f32.mrb[7].mxu0 }
 0x141   : > { %1271 = vst.msk [vmem:[%s2130_s15 + $0xb8] sm:$0xff] %vm200_vm0, %v1517_v37  ;;  %400 = vst.msk [vmem:[%s2130_s15 + $0x90] sm:$0xff] %vm200_vm0, %v345_v38  ;;  %v576_v39 = vpop.f32.mrb[7].mxu1 }
 0x142   : > { %1270 = vst.msk [vmem:[%s2130_s15 + $0xb0] sm:$0xff] %vm200_vm0, %v576_v39 }
 0x143   : > { %v1488_v40 = vpop.f32.mrb[8].mxu0 }
 0x144   : > { %403 = vst.msk [vmem:[%s2130_s15 + $0x108] sm:$0xff] %vm200_vm0, %v1488_v40  ;;  %v1520_v41 = vpop.f32.mrb[8].mxu1  ;;  %v355_v42 = vpop.f32.mrb[9].mxu0 }
 0x145   : > { %1273 = vst.msk [vmem:[%s2130_s15 + $0x128] sm:$0xff] %vm200_vm0, %v1520_v41  ;;  %402 = vst.msk [vmem:[%s2130_s15 + $0x100] sm:$0xff] %vm200_vm0, %v355_v42  ;;  %v586_v43 = vpop.f32.mrb[9].mxu1 }
 0x146   : > { %1272 = vst.msk [vmem:[%s2130_s15 + $0x120] sm:$0xff] %vm200_vm0, %v586_v43 }
 0x147   : > { %v1491_v44 = vpop.f32.mrb[10].mxu0 }
 0x148   : > { %405 = vst.msk [vmem:[%s2130_s15 + $0x118] sm:$0xff] %vm200_vm0, %v1491_v44  ;;  %v1523_v45 = vpop.f32.mrb[10].mxu1  ;;  %v365_v46 = vpop.f32.mrb[11].mxu0 }
 0x149   : > { %1275 = vst.msk [vmem:[%s2130_s15 + $0x138] sm:$0xff] %vm200_vm0, %v1523_v45  ;;  %404 = vst.msk [vmem:[%s2130_s15 + $0x110] sm:$0xff] %vm200_vm0, %v365_v46  ;;  %v596_v47 = vpop.f32.mrb[11].mxu1 }
 0x14a   : > { %1274 = vst.msk [vmem:[%s2130_s15 + $0x130] sm:$0xff] %vm200_vm0, %v596_v47 }
 0x14b   : > { %v1494_v48 = vpop.f32.mrb[12].mxu0 }
 0x14c   : > { %407 = vst.msk [vmem:[%s2130_s15 + $0x188] sm:$0xff] %vm200_vm0, %v1494_v48  ;;  %v1526_v49 = vpop.f32.mrb[12].mxu1  ;;  %v375_v50 = vpop.f32.mrb[13].mxu0 }
 0x14d   : > { %1277 = vst.msk [vmem:[%s2130_s15 + $0x1a8] sm:$0xff] %vm200_vm0, %v1526_v49  ;;  %406 = vst.msk [vmem:[%s2130_s15 + $0x180] sm:$0xff] %vm200_vm0, %v375_v50  ;;  %v606_v51 = vpop.f32.mrb[13].mxu1 }
 0x14e   : > { %1276 = vst.msk [vmem:[%s2130_s15 + $0x1a0] sm:$0xff] %vm200_vm0, %v606_v51 }
 0x14f   : > { %v1497_v52 = vpop.f32.mrb[14].mxu0 }
 0x150   : > { %409 = vst.msk [vmem:[%s2130_s15 + $0x198] sm:$0xff] %vm200_vm0, %v1497_v52  ;;  %v1529_v53 = vpop.f32.mrb[14].mxu1  ;;  %v385_v54 = vpop.f32.mrb[15].mxu0 }
 0x151   : > { %1279 = vst.msk [vmem:[%s2130_s15 + $0x1b8] sm:$0xff] %vm200_vm0, %v1529_v53  ;;  %408 = vst.msk [vmem:[%s2130_s15 + $0x190] sm:$0xff] %vm200_vm0, %v385_v54  ;;  %v616_v55 = vpop.f32.mrb[15].mxu1 }
 0x152   : > { %1278 = vst.msk [vmem:[%s2130_s15 + $0x1b0] sm:$0xff] %vm200_vm0, %v616_v55 }
 0x153   : > { %v1540_v56 = vpop.f32.mrb[16].mxu0 }
 0x154   : > { %1313 = vst.msk [vmem:[%s2130_s15 + $0x48] sm:$0xff] %vm200_vm0, %v1540_v56  ;;  %v1572_v57 = vpop.f32.mrb[16].mxu1  ;;  %v778_v58 = vpop.f32.mrb[17].mxu0 }
 0x155   : > { %1361 = vst.msk [vmem:[%s2130_s15 + $0x68] sm:$0xff] %vm200_vm0, %v1572_v57  ;;  %1312 = vst.msk [vmem:[%s2130_s15 + $0x40] sm:$0xff] %vm200_vm0, %v778_v58  ;;  %v1010_v59 = vpop.f32.mrb[17].mxu1 }
 0x156   : > { %1360 = vst.msk [vmem:[%s2130_s15 + $0x60] sm:$0xff] %vm200_vm0, %v1010_v59 }
 0x157   : > { %v1543_v60 = vpop.f32.mrb[18].mxu0 }
 0x158   : > { %1315 = vst.msk [vmem:[%s2130_s15 + $0x58] sm:$0xff] %vm200_vm0, %v1543_v60  ;;  %v1575_v61 = vpop.f32.mrb[18].mxu1  ;;  %v788_v62 = vpop.f32.mrb[19].mxu0 }
 0x159   : > { %1363 = vst.msk [vmem:[%s2130_s15 + $0x78] sm:$0xff] %vm200_vm0, %v1575_v61  ;;  %1314 = vst.msk [vmem:[%s2130_s15 + $0x50] sm:$0xff] %vm200_vm0, %v788_v62  ;;  %v1020_v63 = vpop.f32.mrb[19].mxu1 }
 0x15a   : > { %1362 = vst.msk [vmem:[%s2130_s15 + $0x70] sm:$0xff] %vm200_vm0, %v1020_v63 }
 0x15b   : > { %v1546_v0 = vpop.f32.mrb[20].mxu0 }
 0x15c   : > { %1317 = vst.msk [vmem:[%s2130_s15 + $0xc8] sm:$0xff] %vm200_vm0, %v1546_v0  ;;  %v1578_v1 = vpop.f32.mrb[20].mxu1  ;;  %v798_v2 = vpop.f32.mrb[21].mxu0 }
 0x15d   : > { %1365 = vst.msk [vmem:[%s2130_s15 + $0xe8] sm:$0xff] %vm200_vm0, %v1578_v1  ;;  %1316 = vst.msk [vmem:[%s2130_s15 + $0xc0] sm:$0xff] %vm200_vm0, %v798_v2  ;;  %v1030_v3 = vpop.f32.mrb[21].mxu1 }
 0x15e   : > { %1364 = vst.msk [vmem:[%s2130_s15 + $0xe0] sm:$0xff] %vm200_vm0, %v1030_v3 }
 0x15f   : > { %v1549_v4 = vpop.f32.mrb[22].mxu0 }
 0x160   : > { %1319 = vst.msk [vmem:[%s2130_s15 + $0xd8] sm:$0xff] %vm200_vm0, %v1549_v4  ;;  %v1581_v5 = vpop.f32.mrb[22].mxu1  ;;  %v808_v6 = vpop.f32.mrb[23].mxu0 }
 0x161   : > { %1367 = vst.msk [vmem:[%s2130_s15 + $0xf8] sm:$0xff] %vm200_vm0, %v1581_v5  ;;  %1318 = vst.msk [vmem:[%s2130_s15 + $0xd0] sm:$0xff] %vm200_vm0, %v808_v6  ;;  %v1040_v7 = vpop.f32.mrb[23].mxu1 }
 0x162   : > { %1366 = vst.msk [vmem:[%s2130_s15 + $0xf0] sm:$0xff] %vm200_vm0, %v1040_v7 }
 0x163   : > { %v1552_v8 = vpop.f32.mrb[24].mxu0 }
 0x164   : > { %1321 = vst.msk [vmem:[%s2130_s15 + $0x148] sm:$0xff] %vm200_vm0, %v1552_v8  ;;  %v1584_v9 = vpop.f32.mrb[24].mxu1  ;;  %v818_v10 = vpop.f32.mrb[25].mxu0 }
 0x165   : > { %1369 = vst.msk [vmem:[%s2130_s15 + $0x168] sm:$0xff] %vm200_vm0, %v1584_v9  ;;  %1320 = vst.msk [vmem:[%s2130_s15 + $0x140] sm:$0xff] %vm200_vm0, %v818_v10  ;;  %v1050_v11 = vpop.f32.mrb[25].mxu1 }
 0x166   : > { %1368 = vst.msk [vmem:[%s2130_s15 + $0x160] sm:$0xff] %vm200_vm0, %v1050_v11 }
 0x167   : > { %v1555_v12 = vpop.f32.mrb[26].mxu0 }
 0x168   : > { %1323 = vst.msk [vmem:[%s2130_s15 + $0x158] sm:$0xff] %vm200_vm0, %v1555_v12  ;;  %v1587_v13 = vpop.f32.mrb[26].mxu1  ;;  %v828_v14 = vpop.f32.mrb[27].mxu0 }
 0x169   : > { %1371 = vst.msk [vmem:[%s2130_s15 + $0x178] sm:$0xff] %vm200_vm0, %v1587_v13  ;;  %1322 = vst.msk [vmem:[%s2130_s15 + $0x150] sm:$0xff] %vm200_vm0, %v828_v14  ;;  %v1060_v15 = vpop.f32.mrb[27].mxu1 }
 0x16a   : > { %1370 = vst.msk [vmem:[%s2130_s15 + $0x170] sm:$0xff] %vm200_vm0, %v1060_v15 }
 0x16b   : > { %v1558_v16 = vpop.f32.mrb[28].mxu0 }
 0x16c   : > { %1325 = vst.msk [vmem:[%s2130_s15 + $0x1c8] sm:$0xff] %vm200_vm0, %v1558_v16  ;;  %v1590_v17 = vpop.f32.mrb[28].mxu1  ;;  %v838_v18 = vpop.f32.mrb[29].mxu0 }
 0x16d   : > { %1373 = vst.msk [vmem:[%s2130_s15 + $0x1e8] sm:$0xff] %vm200_vm0, %v1590_v17  ;;  %1324 = vst.msk [vmem:[%s2130_s15 + $0x1c0] sm:$0xff] %vm200_vm0, %v838_v18  ;;  %v1070_v19 = vpop.f32.mrb[29].mxu1 }
 0x16e   : > { %1372 = vst.msk [vmem:[%s2130_s15 + $0x1e0] sm:$0xff] %vm200_vm0, %v1070_v19 }
 0x16f   : > { %v1561_v20 = vpop.f32.mrb[30].mxu0 }
 0x170   : > { %1327 = vst.msk [vmem:[%s2130_s15 + $0x1d8] sm:$0xff] %vm200_vm0, %v1561_v20  ;;  %v1593_v21 = vpop.f32.mrb[30].mxu1  ;;  %v848_v22 = vpop.f32.mrb[31].mxu0 }
 0x171   : > { %1375 = vst.msk [vmem:[%s2130_s15 + $0x1f8] sm:$0xff] %vm200_vm0, %v1593_v21  ;;  %1326 = vst.msk [vmem:[%s2130_s15 + $0x1d0] sm:$0xff] %vm200_vm0, %v848_v22  ;;  %v1080_v23 = vpop.f32.mrb[31].mxu1 }
 0x172   : > { %1374 = vst.msk [vmem:[%s2130_s15 + $0x1f0] sm:$0xff] %vm200_vm0, %v1080_v23 }
 0x173   : > { %1758 = shalt.err (!%p1755_p7)
}
 0x174   : > { %s1759_s20 = scalar_lea.hbm %s2257_s22, 8192  ;;  %s1763_s25 = scalar_lea.hbm %s2313_s2, 16384 }
 0x175   : > { %p1760_p9 = scmp.ne.s32.totalorder %s2257_s22, %s1759_s20  ;;  %p1764_p5 = scmp.lt.u32.totalorder %s2257_s22, %s2313_s2 }
 0x176   : > { %p1765_p11 = scmp.lt.u32.totalorder %s1763_s25, %s1759_s20  ;;  %p1767_p4 = scmp.lt.u32.totalorder %s1759_s20, %s2257_s22 }
 0x177   : > { %p1761_p1 = pnand %p1760_p9, %p1933_p12 }
 0x178   : > { %p1766_p2 = por %p1765_p11, %p1764_p5 }
 0x179   : > { %p1762_p0 = pneg %p1761_p1 }
 0x17a   : > { %p1768_p6 = por %p1767_p4, %p1766_p2 }
 0x17c   : > { %p1769_p8 = pnand %p1768_p6, %p1762_p0 }
 0x17e   : > { %1772 = shalt.err (!%p1769_p8)
}
 0x17f   : > { %s1822_s30 = smov 128   ;;  %s1823_s23 = smov 8  }
 0x180   : > { %1632 = dma.vmem_to_hbm [thread:$0]  (%p1933_p12), %s2259_s4, 8192, %s2257_s22, %s1107_s13, %s1822_s30, %s1822_s30, %s1823_s23  }
 0x181 PF: > { %s1136_s15 = sand.u32 1, %s1803_s9   ;;  %p2328_p10 = scmp.ne.s32.totalorder %s2318_s16, 0 }
 0x182   : > { %p2329_p13 = scmp.ge.s32.totalorder %s1815_s12, 2  ;;  %s1137_s17 = scalar_lea.sflag [#allocation4], %s1136_s15 }
 0x184   : > { %p1643_p3 = pnand %p2329_p13, %p2328_p10 }
 0x186   : > { %1798 = dma.done.wait (!%p1643_p3), %s1137_s17, 8192  }
 0x187   : > { %1800 = vsyncadd (!%p1643_p3), %s1137_s17, 4294959104  ;;  %p16_p7 = scmp.ge.s32.totalorder %s1895_s21, 4   ;;  %s2330_s9 = smov %s1807_s10 }
 0x188   : > { %s2331_s10 = smov %s1811_s11  ;;  %s2332_s11 = smov %s1929_s8 }
 0x189   : > { %s2333_s12 = smov %s1895_s21  ;;  %18 = sbr.rel (!%p16_p7) target bundleno = 6 (0x6), region = 86 }
 0x190   :  { %1142 = vsyncpa [#allocation3], 1 }
 0x191   :  { %1144 = vsyncpa [#allocation3 + $0x1], 1 }
 0x192   :  { %1145 = vsyncpa [#allocation6], 1 }
 0x193   :  { %1146 = vsyncpa [#allocation4], 1 }
 0x194   :  { %1148 = vsyncpa [#allocation4 + $0x1], 1 }

</bundles_post_ra>
